<compile_context>
chip_gen: v7x
topology: tpu7x:2x2x1
jax: 0.10.0
libtpu: 0.0.40
codegen_flags: <defaults>
</compile_context>

<pallas_src>
import jax
import jax.numpy as jnp
from jax.experimental import pallas as pl
from jax.experimental.pallas import tpu as pltpu


def _round_up(n, m):
    return ((n + m - 1) // m) * m


def _gated_control_kernel(x_ref, y_ref, w_ref, o_ref):
    x = x_ref[...]
    y = y_ref[...]
    # Single fused MXU matmul: [x | y] @ [W1^T ; W2^T] -> (tm, D), f32 accumulate.
    xy = jnp.concatenate([x, y], axis=-1)
    if xy.dtype != w_ref.dtype:
        xy = xy.astype(w_ref.dtype)          # e.g. bf16 operands on v6e/v7x
    z = jnp.dot(xy, w_ref[...], preferred_element_type=jnp.float32)
    gate = jax.nn.sigmoid(z)                 # EUP transcendental (separate slot)
    # TODO(synk): nn.Dropout on the gate omitted (identity in eval mode).
    xf = x.astype(jnp.float32)
    yf = y.astype(jnp.float32)
    # gate*x + (1-gate)*y == y + gate*(x - y)  (one fewer VPU op)
    o_ref[...] = (yf + gate * (xf - yf)).astype(o_ref.dtype)


def prepare_gated_control_weights(w1, w2, dtype=None):
    """Stack nn.Linear weights (out_features, in_features) into one (2D, D)
    operand, ONCE outside the per-call path (avoids a fresh DxD HBM transpose
    per forward). Pass dtype=jnp.bfloat16 on v6e/v7x to halve weight bytes."""
    w = jnp.concatenate([w1.T, w2.T], axis=0)   # (2D, D): [x|y] @ this == xW1^T + yW2^T
    if dtype is not None:
        w = w.astype(dtype)
    return w


def gated_control(x, y, w_stacked, *, tm=256):
    """x, y: (batch, seq, d_model). w_stacked: (2*d_model, d_model) from
    prepare_gated_control_weights."""
    B, S, D = x.shape
    assert w_stacked.shape == (2 * D, D)
    M = B * S

    x2 = x.reshape(M, D)
    y2 = y.reshape(M, D)

    # Large row tile to fill the MXU, but never larger than the (8-aligned) problem.
    tm = min(tm, _round_up(M, 8))
    m_pad = _round_up(M, tm)
    if m_pad != M:
        pad = ((0, m_pad - M), (0, 0))
        x2 = jnp.pad(x2, pad)
        y2 = jnp.pad(y2, pad)

    grid = (m_pad // tm,)
    act_b = x2.dtype.itemsize
    w_b = w_stacked.dtype.itemsize

    # Explicit VMEM budget: double-buffered x/y/out tiles + stacked weight
    # (budgeted as double-buffered) + f32 temporaries, plus 50% headroom.
    vmem_bytes = (
        2 * 2 * tm * D * act_b        # x, y tiles (double-buffered)
        + 2 * tm * D * act_b          # out tile (double-buffered)
        + 2 * 2 * D * D * w_b         # stacked (2D, D) weight
        + 8 * tm * D * 4              # f32 temporaries (xy, z, gate, ...)
    )
    vmem_limit = max(vmem_bytes + vmem_bytes // 2, 32 * 1024 * 1024)
    vmem_limit = min(vmem_limit, 64 * 1024 * 1024)   # stay within v7x physical VMEM

    cost = pl.CostEstimate(
        flops=2 * m_pad * (2 * D) * D + 4 * m_pad * D,
        transcendentals=m_pad * D,                    # sigmoid
        bytes_accessed=3 * m_pad * D * act_b + 2 * D * D * w_b,
    )

    out = pl.pallas_call(
        _gated_control_kernel,
        out_shape=jax.ShapeDtypeStruct((m_pad, D), x.dtype),
        grid_spec=pltpu.PrefetchScalarGridSpec(
            num_scalar_prefetch=0,
            grid=grid,
            in_specs=[
                pl.BlockSpec((tm, D), lambda i: (i, 0)),       # x rows
                pl.BlockSpec((tm, D), lambda i: (i, 0)),       # y rows
                pl.BlockSpec((2 * D, D), lambda i: (0, 0)),    # stacked weights (resident)
            ],
            out_specs=pl.BlockSpec((tm, D), lambda i: (i, 0)),
        ),
        compiler_params=pltpu.CompilerParams(
            dimension_semantics=("parallel",),     # megacore-shardable row grid
            vmem_limit_bytes=int(vmem_limit),
        ),
        cost_estimate=cost,
    )(x2, y2, w_stacked)

    if m_pad != M:
        out = out[:M]
    return out.reshape(B, S, D)


def _reference(x, y, w1, w2):
    gate = jax.nn.sigmoid(
        jnp.einsum("bsd,od->bso", x, w1) + jnp.einsum("bsd,od->bso", y, w2))
    return gate * x + (1.0 - gate) * y


if __name__ == "__main__":
    batch, seq, d_model = 2, 256, 128   # lane dim >= 128 so output stores are unmasked
    key = jax.random.PRNGKey(0)
    kx, ky, kw1, kw2 = jax.random.split(key, 4)

    x = jax.random.normal(kx, (batch, seq, d_model), dtype=jnp.float32)
    y = jax.random.normal(ky, (batch, seq, d_model), dtype=jnp.float32)
    # nn.Linear(bias=False) weights in PyTorch layout: (out_features, in_features).
    bound = 1.0 / (d_model ** 0.5)
    w1 = jax.random.uniform(kw1, (d_model, d_model), jnp.float32, -bound, bound)
    w2 = jax.random.uniform(kw2, (d_model, d_model), jnp.float32, -bound, bound)

    w_stacked = prepare_gated_control_weights(w1, w2)   # once, outside the hot path

    out = jax.block_until_ready(gated_control(x, y, w_stacked))
    ref = _reference(x, y, w1, w2)
    assert jnp.allclose(out, ref, atol=1e-4, rtol=1e-4), "mismatch vs reference"

    # Exercise the padded-tail path (M not a multiple of tm).
    x_t, y_t = x[:, :10], y[:, :10]
    out_t = jax.block_until_ready(gated_control(x_t, y_t, w_stacked))
    ref_t = _reference(x_t, y_t, w1, w2)
    assert jnp.allclose(out_t, ref_t, atol=1e-4, rtol=1e-4), "tail mismatch"

    print("KERNEL_OK")
</pallas_src>

<mosaic_0001>
module attributes {stable_mosaic.version = 11 : i64} {
  func.func @_gated_control_kernel(%arg0: i32, %arg1: memref<256x128xf32, #tpu.memory_space<vmem>>, %arg2: memref<256x128xf32, #tpu.memory_space<vmem>>, %arg3: memref<256x128xf32, #tpu.memory_space<vmem>>, %arg4: memref<256x128xf32, #tpu.memory_space<vmem>>) attributes {dimension_semantics = [#tpu.dimension_semantics<parallel>], iteration_bounds = array<i64: 2>, scalar_prefetch = 0 : i64, scratch_operands = 0 : i64, tpu.core_type = #tpu.core_type<tc>, window_params = [{transform_indices = @transform_0, window_bounds = array<i64: 256, 128>}, {transform_indices = @transform_1, window_bounds = array<i64: 256, 128>}, {pipeline_mode = #tpu.pipeline_mode<synchronous>, transform_indices = @transform_2, window_bounds = array<i64: 256, 128>}, {transform_indices = @transform_3, window_bounds = array<i64: 256, 128>}]} {
    %c0 = arith.constant 0 : index
    %c0_0 = arith.constant 0 : index
    %0 = vector.load %arg1[%c0, %c0_0] : memref<256x128xf32, #tpu.memory_space<vmem>>, vector<256x128xf32>
    %c0_1 = arith.constant 0 : index
    %c0_2 = arith.constant 0 : index
    %1 = vector.load %arg2[%c0_1, %c0_2] : memref<256x128xf32, #tpu.memory_space<vmem>>, vector<256x128xf32>
    %2 = tpu.concatenate %0, %1 in 1 : vector<256x128xf32>, vector<256x128xf32> -> vector<256x256xf32>
    %c0_3 = arith.constant 0 : index
    %c0_4 = arith.constant 0 : index
    %3 = vector.load %arg3[%c0_3, %c0_4] : memref<256x128xf32, #tpu.memory_space<vmem>>, vector<256x128xf32>
    %cst = arith.constant dense<0.000000e+00> : vector<256x128xf32>
    %4 = tpu.matmul %2, %3, %cst {dimension_numbers = #tpu.dot_dimension_numbers<[1], [0], [0], [1], [0, 0, 1, 1], [], []>} : vector<256x256xf32>, vector<256x128xf32>, vector<256x128xf32> -> vector<256x128xf32>
    %5 = arith.negf %4 : vector<256x128xf32>
    %6 = math.exp %5 : vector<256x128xf32>
    %cst_5 = arith.constant 1.000000e+00 : f32
    %7 = vector.broadcast %cst_5 : f32 to vector<256x128xf32>
    %8 = arith.addf %7, %6 : vector<256x128xf32>
    %9 = arith.divf %7, %8 : vector<256x128xf32>
    %10 = arith.subf %0, %1 : vector<256x128xf32>
    %11 = arith.mulf %9, %10 : vector<256x128xf32>
    %12 = arith.addf %1, %11 : vector<256x128xf32>
    %c0_6 = arith.constant 0 : index
    %c0_7 = arith.constant 0 : index
    %13 = vector.load %arg4[%c0_6, %c0_7] : memref<256x128xf32, #tpu.memory_space<vmem>>, vector<256x128xf32>
    tpu.vector_store %arg4[%c0_6, %c0_7], %12 {strides = array<i32>} : memref<256x128xf32, #tpu.memory_space<vmem>>, vector<256x128xf32>,
    return
  }
  func.func @transform_0(%arg0: i32) -> (i32, i32) {
    %c0_i32 = arith.constant 0 : i32
    %c0_i32_0 = arith.constant 0 : i32
    return %arg0, %c0_i32 : i32, i32
  }
  func.func @transform_1(%arg0: i32) -> (i32, i32) {
    %c0_i32 = arith.constant 0 : i32
    %c0_i32_0 = arith.constant 0 : i32
    return %arg0, %c0_i32 : i32, i32
  }
  func.func @transform_2(%arg0: i32) -> (i32, i32) {
    %c0_i32 = arith.constant 0 : i32
    %c0_i32_0 = arith.constant 0 : i32
    %c0_i32_1 = arith.constant 0 : i32
    return %c0_i32, %c0_i32_0 : i32, i32
  }
  func.func @transform_3(%arg0: i32) -> (i32, i32) {
    %c0_i32 = arith.constant 0 : i32
    %c0_i32_0 = arith.constant 0 : i32
    return %arg0, %c0_i32 : i32, i32
  }
}

</mosaic_0001>

<bundles_post_ra>
// kernel: tpu_custom_call.1
= control target key start
LH: loop header
LB: loop body
LE: loop exit
PB: predicated region body
PF: predicated region fallthrough
CT: control target
= control target key end

     0   :  { %s2210_s0 = inlined_call_operand.hbm [shape: f32[512,128], index: 0, kind: input, shape index: {}]   ;;  %s2211_s1 = inlined_call_operand.hbm [shape: f32[512,128], index: 1, kind: input, shape index: {}]   ;;  %s2212_s2 = inlined_call_operand.hbm [shape: f32[256,128], index: 2, kind: input, shape index: {}]   ;;  %s2213_s3 = inlined_call_operand.hbm [shape: f32[512,128], index: 3, kind: output, shape index: {}]  }
   0x1   :  { %2251 = sst [smem:[#allocation33_spill]] %s2210_s0 }
   0x2   :  { %2252 = sst [smem:[#allocation34_spill]] %s2212_s2 }
   0x3   :  { %8 = vsyncpa [#allocation3], 0 }
   0x4   :  { %10 = vsyncpa [#allocation3 + $0x1], 0 }
   0x5   :  { %11 = vsyncpa [#allocation6], 0 }
   0x6   :  { %13 = vsyncpa [#allocation6 + $0x1], 0 }
   0x7   :  { %14 = vsyncpa [#allocation4], 0 }
   0x8   :  { %16 = vsyncpa [#allocation4 + $0x1], 0  ;;  %s1529_s12 = smov 0   ;;  %s1531_s13 = smov 0  }
   0x9   :  { %s1533_s14 = smov 0   ;;  %s1535_s15 = smov 0  }
   0xa LB: > { %s1550_s16 = sadd.s32 4294967295, %s1498_s15   ;;  %s1006_s17 = sadd.s32 4294967294, %s1498_s15   ;;  %s1498_s15 = sphi %s1535_s15, %s2313_s15   ;;  %s1494_s14 = sphi %s1533_s14, %s2312_s14   ;;  %s1490_s13 = sphi %s1531_s13, %s2311_s13   ;;  %s1486_s12 = sphi %s1529_s12, %s2310_s12  }
   0xb   : > { %p42_p0 = scmp.ne.s32.totalorder %s1490_s13, %s1486_s12  ;;  %p2214_p1 = scmp.eq.s32.totalorder %s1550_s16, 0 }
   0xc   : > { %p119_p3 = scmp.eq.s32.totalorder %s1006_s17, 1  ;;  %p1007_p5 = scmp.ge.s32.totalorder %s1498_s15, 1 }
   0xd   : > { %p1559_p4 = por %p2214_p1, %p42_p0  ;;  %p126_p7 = scmp.lt.s32.totalorder %s1498_s15, 3 }
   0xe   : > { %p1564_p6 = por %p119_p3, %p42_p0  ;;  %s1500_s21 = smov [#allocation7]  }
   0xf   : > { %s2253_s18 = scalar_select %p1559_p4, 1, 0 }
  0x10   : > { %s2254_s19 = scalar_select %p1564_p6, 1, 0 }
  0x11   : > { %p1569_p8 = pnand %p1007_p5, %p126_p7  ;;  %s138_s22 = sshll.u32 %s1500_s21, 4  ;;  %s1573_s22 = int_to_ptr.vmem [resolvable:$true] %s138_s22 }
  0x12   : > { %s1585_s24 = sadd.s32 1, %s1498_s15   ;;  %s29_s25 = sadd.s32 1, %s1494_s14 }
  0x13   : > { %s2255_s20 = scalar_select %p1569_p8, 1, 0 }
  0x14   : > { %p1151_p9 = pneg %p1569_p8  ;;  %s26_s26 = ssub.s32 %s1498_s15, %s1585_s24 }
  0x15   : > { %s2257_s2 = sld [smem:[#allocation34_spill]] }
  0x16   : > { %p1580_p11 = pnand %p1151_p9, %p2214_p1 }
  0x18   : > { %p1338_p13 = pneg %p1580_p11 }
  0x1b   : > { %s1336_s29 = scalar_lea.hbm %s2257_s2, 4096 }
  0x1c   : > { %p1337_p12 = scmp.ne.s32.totalorder %s2257_s2, %s1336_s29  ;;  %p1343_p5 = scmp.lt.u32.totalorder %s1336_s29, %s2257_s2 }
  0x1e   : > { %p1339_p0 = pnand %p1338_p13, %p1337_p12 }
  0x20   : > { %p1340_p3 = pneg %p1339_p0 }
  0x22   : > { %p1345_p7 = pnand %p1343_p5, %p1340_p3 }
  0x24   : > { %1348 = shalt.err (!%p1345_p7)
}
  0x25   : > { %s1349_s7 = scalar_lea.vmem %s1573_s22, 4096  ;;  %p1357_p2 = scmp.lt.s32.totalorder %s1573_s22, %s1573_s22 }
  0x26   : > { %p1350_p9 = scmp.ne.s32.totalorder %s1573_s22, %s1349_s7  ;;  %p1358_p6 = scmp.lt.s32.totalorder %s1349_s7, %s1349_s7 }
  0x28   : > { %p1352_p10 = pnand %p1350_p9, %p1338_p13  ;;  %p1359_p4 = por %p1358_p6, %p1357_p2 }
  0x2a   : > { %p1353_p1 = pneg %p1352_p10 }
  0x2c   : > { %p1360_p8 = pnand %p1359_p4, %p1353_p1 }
  0x2e   : > { %1363 = shalt.err (!%p1360_p8)
}
  0x2f   : > { %s2217_s8 = smov 128   ;;  %s2219_s9 = smov 8  }
  0x30   : > { %1154 = dma.hbm_to_vmem [thread:$0]  (!%p1580_p11), %s2257_s2, 4096, %s1573_s22, [#allocation6], %s2217_s8, %s2217_s8, %s2219_s9  }
  0x31   : > { %p27_p1 = scmp.eq.s32.totalorder %s26_s26, 0  ;;  %p36_p2 = scmp.ne.s32.totalorder %s1494_s14, %s1490_s13 }
  0x32   : > { %p37_p4 = scmp.eq.s32.totalorder %s1498_s15, 0  ;;  %p1167_p6 = scmp.lt.s32.totalorder %s1498_s15, 2 }
  0x33   : > { %s1619_s17 = scalar_select %p27_p1, %s1494_s14, %s29_s25  }
  0x34   : > { %p38_p8 = por %p37_p4, %p36_p2  ;;  %p2258_p10 = scmp.eq.s32.totalorder %s1550_s16, 1 }
  0x35   : > { %s152_s23 = sand.u32 1, %s1494_s14   ;;  %s1058_s27 = sshll.u32 %s1498_s15, 12 }
  0x36   : > { %p1623_p12 = por %p2258_p10, %p36_p2  ;;  %s1629_s28 = sshll.u32 %s152_s23, 8 }
  0x37   : > { %s2260_s0 = sld [smem:[#allocation33_spill]]  ;;  %s156_s25 = scalar_lea.vmem [#allocation2], %s1629_s28 }
  0x38   : > { %s163_s26 = sshll.u32 %s156_s25, 4  ;;  %p1637_p11 = pnand %p1167_p6, %p38_p8  ;;  %s1641_s26 = int_to_ptr.vmem [resolvable:$true] %s163_s26 }
  0x39   : > { %s1646_s7 = scalar_lea.hbm %s2211_s1, %s1058_s27  ;;  %s1648_s10 = scalar_lea.sflag [#allocation3], %s152_s23 }
  0x3a   : > { %p1366_p0 = pneg %p1637_p11 }
  0x3d   : > { %s1634_s22 = scalar_lea.hbm %s2260_s0, %s1058_s27  ;;  %s1369_s25 = scalar_lea.hbm %s2260_s0, 8192 }
  0x3e   : > { %s1364_s11 = scalar_lea.hbm %s1634_s22, 4096  ;;  %p1370_p7 = scmp.lt.u32.totalorder %s1634_s22, %s2260_s0 }
  0x3f   : > { %p1365_p13 = scmp.ne.s32.totalorder %s1634_s22, %s1364_s11  ;;  %p1371_p9 = scmp.lt.u32.totalorder %s1369_s25, %s1364_s11 }
  0x40   : > { %p1373_p2 = scmp.lt.u32.totalorder %s1364_s11, %s1634_s22 }
  0x41   : > { %p1367_p3 = pnand %p1366_p0, %p1365_p13  ;;  %p1372_p1 = por %p1371_p9, %p1370_p7 }
  0x43   : > { %p1368_p5 = pneg %p1367_p3  ;;  %p1374_p4 = por %p1373_p2, %p1372_p1 }
  0x45   : > { %p1375_p6 = pnand %p1374_p4, %p1368_p5 }
  0x47   : > { %1378 = shalt.err (!%p1375_p6)
}
  0x48   : > { %s1379_s23 = scalar_lea.vmem %s1641_s26, 4096  ;;  %s1503_s27 = smov [#allocation2]  }
  0x49   : > { %p1380_p8 = scmp.ne.s32.totalorder %s1641_s26, %s1379_s23  ;;  %s1384_s5 = sshll.u32 %s1503_s27, 4  ;;  %s1385_s5 = int_to_ptr.vmem [resolvable:$false] %s1384_s5 }
  0x4a   : > { %s1386_s8 = scalar_lea.vmem %s1385_s5, 8192  ;;  %p1387_p3 = scmp.lt.s32.totalorder %s1641_s26, %s1385_s5 }
  0x4b   : > { %p1382_p10 = pnand %p1380_p8, %p1366_p0  ;;  %p1388_p7 = scmp.lt.s32.totalorder %s1386_s8, %s1379_s23 }
  0x4d   : > { %p1383_p13 = pneg %p1382_p10  ;;  %p1389_p9 = por %p1388_p7, %p1387_p3 }
  0x4f   : > { %p1390_p1 = pnand %p1389_p9, %p1383_p13 }
  0x51   : > { %1393 = shalt.err (!%p1390_p1)
}
  0x52   : > { %s2262_s9 = smov 8   ;;  %s2263_s6 = smov 128  }
  0x53   : > { %1158 = dma.hbm_to_vmem [thread:$0]  (!%p1637_p11), %s1634_s22, 4096, %s1641_s26, %s1648_s10, %s2263_s6, %s2263_s6, %s2262_s9  }
  0x54   : > { %s177_s11 = scalar_lea.vmem [#allocation5], %s1629_s28  ;;  %s173_s30 = sand.u32 1, %s1498_s15  }
  0x55   : > { %s184_s29 = sshll.u32 %s177_s11, 4  ;;  %s1683_s25 = scalar_lea.sflag [#allocation6], %s173_s30  ;;  %s1681_s29 = int_to_ptr.vmem [resolvable:$true] %s184_s29 }
  0x56   : > { %s1394_s23 = scalar_lea.hbm %s1646_s7, 4096  ;;  %s1399_s8 = scalar_lea.hbm %s2211_s1, 8192 }
  0x57   : > { %p1395_p5 = scmp.ne.s32.totalorder %s1646_s7, %s1394_s23  ;;  %p1400_p6 = scmp.lt.u32.totalorder %s1646_s7, %s2211_s1 }
  0x58   : > { %p1401_p8 = scmp.lt.u32.totalorder %s1399_s8, %s1394_s23  ;;  %p1403_p13 = scmp.lt.u32.totalorder %s1394_s23, %s1646_s7 }
  0x59   : > { %p1397_p2 = pnand %p1395_p5, %p1366_p0 }
  0x5a   : > { %p1402_p10 = por %p1401_p8, %p1400_p6 }
  0x5b   : > { %p1398_p4 = pneg %p1397_p2 }
  0x5c   : > { %p1404_p3 = por %p1403_p13, %p1402_p10 }
  0x5e   : > { %p1405_p7 = pnand %p1404_p3, %p1398_p4 }
  0x60   : > { %1408 = shalt.err (!%p1405_p7)
}
  0x61   : > { %s1409_s28 = scalar_lea.vmem %s1681_s29, 4096  ;;  %s1504_s22 = smov [#allocation5]  }
  0x62   : > { %p1410_p9 = scmp.ne.s32.totalorder %s1681_s29, %s1409_s28  ;;  %s1414_s26 = sshll.u32 %s1504_s22, 4  ;;  %s1415_s26 = int_to_ptr.vmem [resolvable:$false] %s1414_s26 }
  0x63   : > { %s1416_s0 = scalar_lea.vmem %s1415_s26, 8192  ;;  %p1417_p2 = scmp.lt.s32.totalorder %s1681_s29, %s1415_s26 }
  0x64   : > { %p1412_p1 = pnand %p1410_p9, %p1366_p0  ;;  %p1418_p6 = scmp.lt.s32.totalorder %s1416_s0, %s1409_s28 }
  0x66   : > { %p1413_p5 = pneg %p1412_p1  ;;  %p1419_p8 = por %p1418_p6, %p1417_p2 }
  0x68   : > { %p1420_p10 = pnand %p1419_p8, %p1413_p5 }
  0x6a   : > { %1423 = shalt.err (!%p1420_p10)
}
  0x6b   : > { %1161 = dma.hbm_to_vmem [thread:$0]  (!%p1637_p11), %s1646_s7, 4096, %s1681_s29, %s1683_s25, %s2263_s6, %s2263_s6, %s2262_s9  }
  0x6c   : > { %p2264_p0 = scmp.ne.s32.totalorder %s2255_s20, 0 }
  0x6e   : > { %196 = sbr.rel (%p2264_p0) target bundleno = 515 (0x203), region = 32 }
  0x75   : > { %s1715_s2 = sand.u32 1, %s1490_s13   ;;  %p2265_p4 = scmp.ne.s32.totalorder %s2253_s18, 0 }
  0x76   : > { %s1718_s10 = sshll.u32 %s1715_s2, 8  ;;  %s199_s4 = scalar_lea.sflag [#allocation3], %s1715_s2 }
  0x77   : > { %s1722_s11 = scalar_lea.vmem [#allocation2], %s1718_s10 }
  0x78   : > { %1469 = dma.done.wait (%p2265_p4), %s199_s4, 4096  }
  0x79   : > { %1471 = vsyncadd (%p2265_p4), %s199_s4, 4294963200  ;;  %s207_s20 = sand.u32 1, %s1550_s16   ;;  %s1730_s9 = scalar_lea.vmem [#allocation5], %s1718_s10 }
  0x7a   : > { %s208_s7 = scalar_lea.sflag [#allocation6], %s207_s20 }
  0x7b   : > { %1473 = dma.done.wait (%p2265_p4), %s208_s7, 4096  }
  0x7c   : > { %1475 = vsyncadd (%p2265_p4), %s208_s7, 4294963200  ;;  %p2266_p11 = scmp.eq.s32.totalorder %s1550_s16, 0 }
  0x7e   : > { %1477 = dma.done.wait (%p2266_p11), [#allocation6], 4096   ;;  %p2267_p13 = pmov %p2266_p11 }
  0x7f   : > { %v1505_v0 = vmov 0.0|0.0   ;;  %v310_v1 = vld [vmem:[#allocation7] sm:$0xff]  ;;  %v311_v2 = vld [vmem:[#allocation7 + $0x8] sm:$0xff]  ;;  %v312_v3 = vld [vmem:[#allocation7 + $0x10] sm:$0xff]  ;;  %s2041_s18 = scalar_lea.vmem [#allocation8], %s1718_s10  ;;  %s1060_s6 = sshll.u32 %s1550_s16, 12 }
  0x80   : > { %1479 = vsyncadd (%p2267_p13), [#allocation6], 4294963200  ;;  %1061 = vmatprep.subr.bf16.mxu0 %v1505_v0  ;;  %1109 = vmatprep.subr.bf16.mxu1 %v1505_v0  ;;  %v1062_v4 = vpack.c.bf16 %v311_v2, %v310_v1  ;;  %v313_v5 = vld [vmem:[#allocation7 + $0x18] sm:$0xff]  ;;  %v314_v7 = vld [vmem:[#allocation7 + $0x20] sm:$0xff]  ;;  %s901_s29 = sshll.u32 %s2041_s18, 4  ;;  %s2162_s23 = scalar_lea.hbm %s2213_s3, %s1060_s6  ;;  %s2164_s29 = int_to_ptr.vmem [resolvable:$true] %s901_s29 }
  0x81   : > { %v1065_v6 = vpack.c.bf16 %v313_v5, %v312_v3  ;;  %v315_v8 = vld [vmem:[#allocation7 + $0x28] sm:$0xff]  ;;  %v316_v10 = vld [vmem:[#allocation7 + $0x30] sm:$0xff]  ;;  %v317_v11 = vld [vmem:[#allocation7 + $0x38] sm:$0xff]  ;;  %s888_s16 = scalar_lea.sflag [#allocation4], %s1715_s2  ;;  %s1424_s27 = scalar_lea.vmem %s2164_s29, 4096 }
  0x82   : > { %1063 = vmatpush1.bf16.msra.mxu0 %v1062_v4  ;;  %1125 = vmatpush1.bf16.msra.mxu1 %v1062_v4  ;;  %v1068_v9 = vpack.c.bf16 %v315_v8, %v314_v7  ;;  %v1747_v12 = vld [vmem:[%s1730_s9] sm:$0xff]  ;;  %v1071_v13 = vpack.c.bf16 %v317_v11, %v316_v10  ;;  %v319_v16 = vld [vmem:[#allocation7 + $0x48] sm:$0xff]  ;;  %v320_v18 = vld [vmem:[#allocation7 + $0x50] sm:$0xff]  ;;  %p1425_p3 = scmp.ne.s32.totalorder %s2164_s29, %s1424_s27  ;;  %s1506_s5 = smov [#allocation8]  }
  0x83   : > { %1064 = vmatprep.subr.bf16.mxu0 %v1505_v0  ;;  %1110 = vmatprep.subr.bf16.mxu1 %v1505_v0  ;;  %v1750_v14 = vld [vmem:[%s1730_s9 + $0x80] sm:$0xff]  ;;  %v321_v19 = vld [vmem:[#allocation7 + $0x58] sm:$0xff]  ;;  %v323_v22 = vld [vmem:[#allocation7 + $0x68] sm:$0xff]  ;;  %s1428_s8 = sshll.u32 %s1506_s5, 4  ;;  %s1429_s8 = int_to_ptr.vmem [resolvable:$false] %s1428_s8 }
  0x84   : > { %v318_v15 = vld [vmem:[#allocation7 + $0x40] sm:$0xff]  ;;  %406 = vmatprep.mubr.f32.mxu0 %v1747_v12  ;;  %486 = vmatprep.mubr.f32.mxu1 %v1750_v14  ;;  %v1077_v20 = vpack.c.bf16 %v321_v19, %v320_v18  ;;  %v324_v24 = vld [vmem:[#allocation7 + $0x70] sm:$0xff]  ;;  %v325_v25 = vld [vmem:[#allocation7 + $0x78] sm:$0xff]  ;;  %p1426_p7 = pnand %p1425_p3, %p1623_p12  ;;  %s1430_s28 = scalar_lea.vmem %s1429_s8, 8192 }
  0x85   : > { %v1074_v17 = vpack.c.bf16 %v319_v16, %v318_v15  ;;  %v322_v21 = vld [vmem:[#allocation7 + $0x60] sm:$0xff]  ;;  %v1083_v26 = vpack.c.bf16 %v325_v25, %v324_v24  ;;  %v327_v28 = vld [vmem:[#allocation7 + $0x88] sm:$0xff]  ;;  %v328_v30 = vld [vmem:[#allocation7 + $0x90] sm:$0xff]  ;;  %p1431_p1 = scmp.lt.s32.totalorder %s2164_s29, %s1429_s8  ;;  %p1432_p5 = scmp.lt.s32.totalorder %s1430_s28, %s1424_s27 }
  0x86   : > { %1066 = vmatpush1.bf16.msra.mxu0 %v1065_v6  ;;  %1126 = vmatpush1.bf16.msra.mxu1 %v1065_v6  ;;  %v1080_v23 = vpack.c.bf16 %v323_v22, %v322_v21  ;;  %v326_v27 = vld [vmem:[#allocation7 + $0x80] sm:$0xff]  ;;  %v329_v31 = vld [vmem:[#allocation7 + $0x98] sm:$0xff]  ;;  %v331_v34 = vld [vmem:[#allocation7 + $0xa8] sm:$0xff]  ;;  %p1427_p9 = pneg %p1426_p7 }
  0x87   : > { %1067 = vmatprep.subr.bf16.mxu0 %v1505_v0  ;;  %1111 = vmatprep.subr.bf16.mxu1 %v1505_v0  ;;  %v1086_v29 = vpack.c.bf16 %v327_v28, %v326_v27  ;;  %v1089_v32 = vpack.c.bf16 %v329_v31, %v328_v30  ;;  %v330_v33 = vld [vmem:[#allocation7 + $0xa0] sm:$0xff]  ;;  %v332_v36 = vld [vmem:[#allocation7 + $0xb0] sm:$0xff]  ;;  %v333_v37 = vld [vmem:[#allocation7 + $0xb8] sm:$0xff]  ;;  %p1433_p2 = por %p1432_p5, %p1431_p1 }
  0x88   : > { %v1092_v35 = vpack.c.bf16 %v331_v34, %v330_v33  ;;  %v1095_v38 = vpack.c.bf16 %v333_v37, %v332_v36  ;;  %v334_v39 = vld [vmem:[#allocation7 + $0xc0] sm:$0xff]  ;;  %v335_v40 = vld [vmem:[#allocation7 + $0xc8] sm:$0xff]  ;;  %v336_v42 = vld [vmem:[#allocation7 + $0xd0] sm:$0xff] }
  0x89   : > { %v1098_v41 = vpack.c.bf16 %v335_v40, %v334_v39  ;;  %v337_v43 = vld [vmem:[#allocation7 + $0xd8] sm:$0xff]  ;;  %v338_v45 = vld [vmem:[#allocation7 + $0xe0] sm:$0xff]  ;;  %v339_v46 = vld [vmem:[#allocation7 + $0xe8] sm:$0xff]  ;;  %p1434_p6 = pnand %p1433_p2, %p1427_p9 }
  0x8a   : > { %1069 = vmatpush1.bf16.msra.mxu0 %v1068_v9  ;;  %1127 = vmatpush1.bf16.msra.mxu1 %v1068_v9  ;;  %v1101_v44 = vpack.c.bf16 %v337_v43, %v336_v42  ;;  %v1104_v47 = vpack.c.bf16 %v339_v46, %v338_v45  ;;  %v340_v48 = vld [vmem:[#allocation7 + $0xf0] sm:$0xff]  ;;  %v341_v49 = vld [vmem:[#allocation7 + $0xf8] sm:$0xff]  ;;  %v1781_v51 = vld [vmem:[%s1722_s11] sm:$0xff] }
  0x8b   : > { %1070 = vmatprep.subr.bf16.mxu0 %v1505_v0  ;;  %1112 = vmatprep.subr.bf16.mxu1 %v1505_v0  ;;  %v1107_v50 = vpack.c.bf16 %v341_v49, %v340_v48  ;;  %v1784_v52 = vld [vmem:[%s1722_s11 + $0x80] sm:$0xff]  ;;  %v1787_v53 = vld [vmem:[%s1730_s9 + $0x8] sm:$0xff]  ;;  %v1803_v57 = vld [vmem:[%s1730_s9 + $0x10] sm:$0xff] }
  0x8c   : > { %v1790_v54 = vld [vmem:[%s1730_s9 + $0x88] sm:$0xff]  ;;  %v1806_v58 = vld [vmem:[%s1730_s9 + $0x90] sm:$0xff]  ;;  %v1819_v61 = vld [vmem:[%s1730_s9 + $0x18] sm:$0xff] }
  0x8d   : > { %v1797_v55 = vld [vmem:[%s1722_s11 + $0x8] sm:$0xff]  ;;  %v1813_v59 = vld [vmem:[%s1722_s11 + $0x10] sm:$0xff]  ;;  %v1822_v62 = vld [vmem:[%s1730_s9 + $0x98] sm:$0xff] }
  0x8e   : > { %1072 = vmatpush1.bf16.msra.mxu0 %v1071_v13  ;;  %1128 = vmatpush1.bf16.msra.mxu1 %v1071_v13  ;;  %v1800_v56 = vld [vmem:[%s1722_s11 + $0x88] sm:$0xff]  ;;  %v1816_v60 = vld [vmem:[%s1722_s11 + $0x90] sm:$0xff]  ;;  %v1829_v63 = vld [vmem:[%s1722_s11 + $0x18] sm:$0xff] }
  0x8f   : > { %1073 = vmatprep.subr.bf16.mxu0 %v1505_v0  ;;  %1113 = vmatprep.subr.bf16.mxu1 %v1505_v0  ;;  %v1835_v1 = vld [vmem:[%s1730_s9 + $0x20] sm:$0xff]  ;;  %v1851_v5 = vld [vmem:[%s1730_s9 + $0x28] sm:$0xff]  ;;  %v1867_v9 = vld [vmem:[%s1730_s9 + $0x30] sm:$0xff] }
  0x90   : > { %v1838_v2 = vld [vmem:[%s1730_s9 + $0xa0] sm:$0xff]  ;;  %v1854_v6 = vld [vmem:[%s1730_s9 + $0xa8] sm:$0xff]  ;;  %v1870_v10 = vld [vmem:[%s1730_s9 + $0xb0] sm:$0xff] }
  0x91   : > { %v1845_v3 = vld [vmem:[%s1722_s11 + $0x20] sm:$0xff]  ;;  %v1861_v7 = vld [vmem:[%s1722_s11 + $0x28] sm:$0xff]  ;;  %v1877_v11 = vld [vmem:[%s1722_s11 + $0x30] sm:$0xff] }
  0x92   : > { %1075 = vmatpush1.bf16.msra.mxu0 %v1074_v17  ;;  %1129 = vmatpush1.bf16.msra.mxu1 %v1074_v17  ;;  %v1848_v4 = vld [vmem:[%s1722_s11 + $0xa0] sm:$0xff]  ;;  %v1864_v8 = vld [vmem:[%s1722_s11 + $0xa8] sm:$0xff]  ;;  %v1880_v13 = vld [vmem:[%s1722_s11 + $0xb0] sm:$0xff] }
  0x93   : > { %1076 = vmatprep.subr.bf16.mxu0 %v1505_v0  ;;  %1114 = vmatprep.subr.bf16.mxu1 %v1505_v0  ;;  %v1883_v15 = vld [vmem:[%s1730_s9 + $0x38] sm:$0xff]  ;;  %v1899_v19 = vld [vmem:[%s1730_s9 + $0x40] sm:$0xff]  ;;  %v1918_v24 = vld [vmem:[%s1730_s9 + $0xc8] sm:$0xff] }
  0x94   : > { %v1886_v16 = vld [vmem:[%s1730_s9 + $0xb8] sm:$0xff]  ;;  %v1909_v21 = vld [vmem:[%s1722_s11 + $0x40] sm:$0xff]  ;;  %v1925_v25 = vld [vmem:[%s1722_s11 + $0x48] sm:$0xff] }
  0x95   : > { %v1893_v17 = vld [vmem:[%s1722_s11 + $0x38] sm:$0xff]  ;;  %v1912_v22 = vld [vmem:[%s1722_s11 + $0xc0] sm:$0xff]  ;;  %v1931_v27 = vld [vmem:[%s1730_s9 + $0x50] sm:$0xff] }
  0x96   : > { %1078 = vmatpush1.bf16.msra.mxu0 %v1077_v20  ;;  %1130 = vmatpush1.bf16.msra.mxu1 %v1077_v20  ;;  %v1896_v18 = vld [vmem:[%s1722_s11 + $0xb8] sm:$0xff]  ;;  %v1902_v20 = vld [vmem:[%s1730_s9 + $0xc0] sm:$0xff]  ;;  %v1934_v28 = vld [vmem:[%s1730_s9 + $0xd0] sm:$0xff] }
  0x97   : > { %1079 = vmatprep.subr.bf16.mxu0 %v1505_v0  ;;  %1115 = vmatprep.subr.bf16.mxu1 %v1505_v0  ;;  %v1944_v30 = vld [vmem:[%s1722_s11 + $0xd0] sm:$0xff]  ;;  %v1947_v31 = vld [vmem:[%s1730_s9 + $0x58] sm:$0xff]  ;;  %v1966_v36 = vld [vmem:[%s1730_s9 + $0xe0] sm:$0xff] }
  0x98   : > { %2268 = vst [vmem:[#allocation13_spill] sm:$0xff] %v1947_v31  ;;  %v1957_v33 = vld [vmem:[%s1722_s11 + $0x58] sm:$0xff]  ;;  %2273 = vst [vmem:[#allocation18_spill] sm:$0xff] %v1966_v36  ;;  %v1973_v37 = vld [vmem:[%s1722_s11 + $0x60] sm:$0xff] }
  0x99   : > { %2270 = vst [vmem:[#allocation15_spill] sm:$0xff] %v1957_v33  ;;  %v1960_v34 = vld [vmem:[%s1722_s11 + $0xd8] sm:$0xff]  ;;  %2274 = vst [vmem:[#allocation19_spill] sm:$0xff] %v1973_v37  ;;  %v1979_v39 = vld [vmem:[%s1730_s9 + $0x68] sm:$0xff] }
  0x9a   : > { %1081 = vmatpush1.bf16.msra.mxu0 %v1080_v23  ;;  %1131 = vmatpush1.bf16.msra.mxu1 %v1080_v23  ;;  %v1915_v23 = vld [vmem:[%s1730_s9 + $0x48] sm:$0xff]  ;;  %2271 = vst [vmem:[#allocation16_spill] sm:$0xff] %v1960_v34  ;;  %2276 = vst [vmem:[#allocation21_spill] sm:$0xff] %v1979_v39  ;;  %v1995_v43 = vld [vmem:[%s1730_s9 + $0x70] sm:$0xff] }
  0x9b   : > { %1082 = vmatprep.subr.bf16.mxu0 %v1505_v0  ;;  %1116 = vmatprep.subr.bf16.mxu1 %v1505_v0  ;;  %v1982_v40 = vld [vmem:[%s1730_s9 + $0xe8] sm:$0xff]  ;;  %2280 = vst [vmem:[#allocation25_spill] sm:$0xff] %v1995_v43  ;;  %v2005_v45 = vld [vmem:[%s1722_s11 + $0x70] sm:$0xff]  ;;  %v2014_v48 = vld [vmem:[%s1730_s9 + $0xf8] sm:$0xff] }
  0x9c   : > { %2277 = vst [vmem:[#allocation22_spill] sm:$0xff] %v1982_v40  ;;  %v1992_v42 = vld [vmem:[%s1722_s11 + $0xe8] sm:$0xff]  ;;  %2282 = vst [vmem:[#allocation27_spill] sm:$0xff] %v2005_v45  ;;  %v2008_v46 = vld [vmem:[%s1722_s11 + $0xf0] sm:$0xff] }
  0x9d   : > { %2279 = vst [vmem:[#allocation24_spill] sm:$0xff] %v1992_v42  ;;  %2283 = vst [vmem:[#allocation28_spill] sm:$0xff] %v2008_v46  ;;  %v2021_v49 = vld [vmem:[%s1722_s11 + $0x78] sm:$0xff] }
  0x9e   : > { %1084 = vmatpush1.bf16.msra.mxu0 %v1083_v26  ;;  %1132 = vmatpush1.bf16.msra.mxu1 %v1083_v26  ;;  %v1928_v26 = vld [vmem:[%s1722_s11 + $0xc8] sm:$0xff]  ;;  %2285 = vst [vmem:[#allocation30_spill] sm:$0xff] %v2014_v48  ;;  %2286 = vst [vmem:[#allocation31_spill] sm:$0xff] %v2021_v49 }
  0x9f   : > { %1085 = vmatprep.subr.bf16.mxu0 %v1505_v0  ;;  %1117 = vmatprep.subr.bf16.mxu1 %v1505_v0 }
  0xa2   : > { %1087 = vmatpush1.bf16.msra.mxu0 %v1086_v29  ;;  %1133 = vmatpush1.bf16.msra.mxu1 %v1086_v29  ;;  %v1941_v29 = vld [vmem:[%s1722_s11 + $0x50] sm:$0xff] }
  0xa3   : > { %1088 = vmatprep.subr.bf16.mxu0 %v1505_v0  ;;  %1118 = vmatprep.subr.bf16.mxu1 %v1505_v0 }
  0xa6   : > { %1090 = vmatpush1.bf16.msra.mxu0 %v1089_v32  ;;  %1134 = vmatpush1.bf16.msra.mxu1 %v1089_v32  ;;  %v1950_v32 = vld [vmem:[%s1730_s9 + $0xd8] sm:$0xff] }
  0xa7   : > { %1091 = vmatprep.subr.bf16.mxu0 %v1505_v0  ;;  %1119 = vmatprep.subr.bf16.mxu1 %v1505_v0  ;;  %2269 = vst [vmem:[#allocation14_spill] sm:$0xff] %v1950_v32 }
  0xaa   : > { %1093 = vmatpush1.bf16.msra.mxu0 %v1092_v35  ;;  %1135 = vmatpush1.bf16.msra.mxu1 %v1092_v35  ;;  %v1963_v35 = vld [vmem:[%s1730_s9 + $0x60] sm:$0xff] }
  0xab   : > { %1094 = vmatprep.subr.bf16.mxu0 %v1505_v0  ;;  %1120 = vmatprep.subr.bf16.mxu1 %v1505_v0  ;;  %2272 = vst [vmem:[#allocation17_spill] sm:$0xff] %v1963_v35 }
  0xae   : > { %1096 = vmatpush1.bf16.msra.mxu0 %v1095_v38  ;;  %1136 = vmatpush1.bf16.msra.mxu1 %v1095_v38  ;;  %v1976_v38 = vld [vmem:[%s1722_s11 + $0xe0] sm:$0xff] }
  0xaf   : > { %1097 = vmatprep.subr.bf16.mxu0 %v1505_v0  ;;  %1121 = vmatprep.subr.bf16.mxu1 %v1505_v0  ;;  %2275 = vst [vmem:[#allocation20_spill] sm:$0xff] %v1976_v38 }
  0xb2   : > { %1099 = vmatpush1.bf16.msra.mxu0 %v1098_v41  ;;  %1137 = vmatpush1.bf16.msra.mxu1 %v1098_v41  ;;  %v1989_v41 = vld [vmem:[%s1722_s11 + $0x68] sm:$0xff] }
  0xb3   : > { %1100 = vmatprep.subr.bf16.mxu0 %v1505_v0  ;;  %1122 = vmatprep.subr.bf16.mxu1 %v1505_v0  ;;  %2278 = vst [vmem:[#allocation23_spill] sm:$0xff] %v1989_v41 }
  0xb6   : > { %1102 = vmatpush1.bf16.msra.mxu0 %v1101_v44  ;;  %1138 = vmatpush1.bf16.msra.mxu1 %v1101_v44  ;;  %v1998_v44 = vld [vmem:[%s1730_s9 + $0xf0] sm:$0xff] }
  0xb7   : > { %1103 = vmatprep.subr.bf16.mxu0 %v1505_v0  ;;  %1123 = vmatprep.subr.bf16.mxu1 %v1505_v0  ;;  %2281 = vst [vmem:[#allocation26_spill] sm:$0xff] %v1998_v44 }
  0xba   : > { %1105 = vmatpush1.bf16.msra.mxu0 %v1104_v47  ;;  %1139 = vmatpush1.bf16.msra.mxu1 %v1104_v47  ;;  %v2011_v47 = vld [vmem:[%s1730_s9 + $0x78] sm:$0xff] }
  0xbb   : > { %1106 = vmatprep.subr.bf16.mxu0 %v1505_v0  ;;  %1124 = vmatprep.subr.bf16.mxu1 %v1505_v0  ;;  %v1832_v0 = vld [vmem:[%s1722_s11 + $0x98] sm:$0xff]  ;;  %2284 = vst [vmem:[#allocation29_spill] sm:$0xff] %v2011_v47 }
  0xbe   : > { %1108 = vmatpush1.bf16.msra.mxu0 %v1107_v50  ;;  %1140 = vmatpush1.bf16.msra.mxu1 %v1107_v50  ;;  %v2024_v50 = vld [vmem:[%s1722_s11 + $0xf8] sm:$0xff] }
  0xbf   : > { %2287 = vst [vmem:[#allocation32_spill] sm:$0xff] %v2024_v50 }
  0xc1   : > { %407 = vmatmul.mubr.f32.vlgmr.msra.gmra.mrb[0].mxu0 %v1781_v51  ;;  %487 = vmatmul.mubr.f32.vlgmr.msra.gmra.mrb[0].mxu1 %v1784_v52 }
  0xc2   : > { %411 = vmatprep.mubr.f32.mxu0 %v1787_v53  ;;  %491 = vmatprep.mubr.f32.mxu1 %v1790_v54 }
  0xc5   : > { %412 = vmatmul.mubr.f32.gmra.mrb[2].mxu0 %v1797_v55  ;;  %492 = vmatmul.mubr.f32.gmra.mrb[2].mxu1 %v1800_v56 }
  0xc6   : > { %416 = vmatprep.mubr.f32.mxu0 %v1803_v57  ;;  %496 = vmatprep.mubr.f32.mxu1 %v1806_v58 }
  0xc9   : > { %417 = vmatmul.mubr.f32.gmra.mrb[4].mxu0 %v1813_v59  ;;  %497 = vmatmul.mubr.f32.gmra.mrb[4].mxu1 %v1816_v60 }
  0xca   : > { %421 = vmatprep.mubr.f32.mxu0 %v1819_v61  ;;  %501 = vmatprep.mubr.f32.mxu1 %v1822_v62 }
  0xcd   : > { %422 = vmatmul.mubr.f32.gmra.mrb[6].mxu0 %v1829_v63  ;;  %502 = vmatmul.mubr.f32.gmra.mrb[6].mxu1 %v1832_v0 }
  0xce   : > { %426 = vmatprep.mubr.f32.mxu0 %v1835_v1  ;;  %506 = vmatprep.mubr.f32.mxu1 %v1838_v2 }
  0xd1   : > { %427 = vmatmul.mubr.f32.gmra.mrb[8].mxu0 %v1845_v3  ;;  %507 = vmatmul.mubr.f32.gmra.mrb[8].mxu1 %v1848_v4 }
  0xd2   : > { %431 = vmatprep.mubr.f32.mxu0 %v1851_v5  ;;  %511 = vmatprep.mubr.f32.mxu1 %v1854_v6 }
  0xd5   : > { %432 = vmatmul.mubr.f32.gmra.mrb[10].mxu0 %v1861_v7  ;;  %512 = vmatmul.mubr.f32.gmra.mrb[10].mxu1 %v1864_v8 }
  0xd6   : > { %436 = vmatprep.mubr.f32.mxu0 %v1867_v9  ;;  %516 = vmatprep.mubr.f32.mxu1 %v1870_v10 }
  0xd9   : > { %437 = vmatmul.mubr.f32.gmra.mrb[12].mxu0 %v1877_v11  ;;  %517 = vmatmul.mubr.f32.gmra.mrb[12].mxu1 %v1880_v13 }
  0xda   : > { %441 = vmatprep.mubr.f32.mxu0 %v1883_v15  ;;  %521 = vmatprep.mubr.f32.mxu1 %v1886_v16 }
  0xdd   : > { %442 = vmatmul.mubr.f32.gmra.mrb[14].mxu0 %v1893_v17  ;;  %522 = vmatmul.mubr.f32.gmra.mrb[14].mxu1 %v1896_v18 }
  0xde   : > { %446 = vmatprep.mubr.f32.mxu0 %v1899_v19  ;;  %526 = vmatprep.mubr.f32.mxu1 %v1902_v20 }
  0xe1   : > { %447 = vmatmul.mubr.f32.gmra.mrb[16].mxu0 %v1909_v21  ;;  %527 = vmatmul.mubr.f32.gmra.mrb[16].mxu1 %v1912_v22 }
  0xe2   : > { %451 = vmatprep.mubr.f32.mxu0 %v1915_v23  ;;  %531 = vmatprep.mubr.f32.mxu1 %v1918_v24 }
  0xe5   : > { %452 = vmatmul.mubr.f32.gmra.mrb[18].mxu0 %v1925_v25  ;;  %532 = vmatmul.mubr.f32.gmra.mrb[18].mxu1 %v1928_v26 }
  0xe6   : > { %456 = vmatprep.mubr.f32.mxu0 %v1931_v27  ;;  %536 = vmatprep.mubr.f32.mxu1 %v1934_v28 }
  0xe9   : > { %457 = vmatmul.mubr.f32.gmra.mrb[20].mxu0 %v1941_v29  ;;  %537 = vmatmul.mubr.f32.gmra.mrb[20].mxu1 %v1944_v30 }
  0xea   : > { %461 = vmatprep.mubr.f32.mxu0 %v1947_v31  ;;  %541 = vmatprep.mubr.f32.mxu1 %v1950_v32 }
  0xed   : > { %462 = vmatmul.mubr.f32.gmra.mrb[22].mxu0 %v1957_v33  ;;  %542 = vmatmul.mubr.f32.gmra.mrb[22].mxu1 %v1960_v34 }
  0xee   : > { %466 = vmatprep.mubr.f32.mxu0 %v1963_v35  ;;  %546 = vmatprep.mubr.f32.mxu1 %v1966_v36 }
  0xf1   : > { %467 = vmatmul.mubr.f32.gmra.mrb[24].mxu0 %v1973_v37  ;;  %547 = vmatmul.mubr.f32.gmra.mrb[24].mxu1 %v1976_v38 }
  0xf2   : > { %471 = vmatprep.mubr.f32.mxu0 %v1979_v39  ;;  %551 = vmatprep.mubr.f32.mxu1 %v1982_v40 }
  0xf5   : > { %472 = vmatmul.mubr.f32.gmra.mrb[26].mxu0 %v1989_v41  ;;  %552 = vmatmul.mubr.f32.gmra.mrb[26].mxu1 %v1992_v42 }
  0xf6   : > { %476 = vmatprep.mubr.f32.mxu0 %v1995_v43  ;;  %556 = vmatprep.mubr.f32.mxu1 %v1998_v44 }
  0xf9   : > { %477 = vmatmul.mubr.f32.gmra.mrb[28].mxu0 %v2005_v45  ;;  %557 = vmatmul.mubr.f32.gmra.mrb[28].mxu1 %v2008_v46 }
  0xfa   : > { %481 = vmatprep.mubr.f32.mxu0 %v2011_v47  ;;  %561 = vmatprep.mubr.f32.mxu1 %v2014_v48 }
  0xfd   : > { %482 = vmatmul.mubr.f32.gmra.mrb[30].mxu0 %v2021_v49  ;;  %562 = vmatmul.mubr.f32.gmra.mrb[30].mxu1 %v2024_v50 }
 0x194   : > { %v408_v44 = vpop.f32.mrb[0].mxu0  ;;  %v488_v43 = vpop.f32.mrb[0].mxu1 }
 0x195   : > { %v1021_v42 = vmul.f32 -1.442695, %v408_v44  ;;  %v1037_v40 = vmul.f32 -1.442695, %v488_v43  ;;  %v410_v41 = vpop.f32.mrb[1].mxu0  ;;  %v490_v45 = vpop.f32.mrb[1].mxu1 }
 0x197   : > { %1208 = vpow2.f32 %v1021_v42 }
 0x198   : > { %1210 = vpow2.f32 %v1037_v40  ;;  %v413_v46 = vpop.f32.mrb[2].mxu0  ;;  %v493_v47 = vpop.f32.mrb[2].mxu1 }
 0x199   : > { %v1022_v39 = vmul.f32 -1.442695, %v413_v46  ;;  %v1038_v48 = vmul.f32 -1.442695, %v493_v47  ;;  %v415_v38 = vpop.f32.mrb[3].mxu0  ;;  %v495_v36 = vpop.f32.mrb[3].mxu1 }
 0x19b   : > { %1212 = vpow2.f32 %v1022_v39 }
 0x19c   : > { %1214 = vpow2.f32 %v1038_v48  ;;  %v418_v37 = vpop.f32.mrb[4].mxu0  ;;  %v498_v49 = vpop.f32.mrb[4].mxu1 }
 0x19d   : > { %v1023_v35 = vmul.f32 -1.442695, %v418_v37  ;;  %v1039_v50 = vmul.f32 -1.442695, %v498_v49  ;;  %v420_v34 = vpop.f32.mrb[5].mxu0  ;;  %v500_v32 = vpop.f32.mrb[5].mxu1 }
 0x19f   : > { %1216 = vpow2.f32 %v1023_v35 }
 0x1a0   : > { %1218 = vpow2.f32 %v1039_v50  ;;  %v423_v41 = vpop.f32.mrb[6].mxu0  ;;  %v503_v43 = vpop.f32.mrb[6].mxu1 }
 0x1a1   : > { %v1209_v42 = vpop.eup %1208  ;;  %v1024_v40 = vmul.f32 -1.442695, %v423_v41  ;;  %v425_v44 = vpop.f32.mrb[7].mxu0  ;;  %v1040_v38 = vmul.f32 -1.442695, %v503_v43 }
 0x1a2   : > { %v505_v45 = vpop.f32.mrb[7].mxu1  ;;  %v1211_v46 = vpop.eup %1210  ;;  %v663_v47 = vadd.f32 1.0, %v1209_v42 }
 0x1a3   : > { %v679_v36 = vadd.f32 1.0, %v1211_v46  ;;  %1220 = vpow2.f32 %v1024_v40 }
 0x1a4   : > { %1222 = vrcp.f32 %v663_v47  ;;  %v428_v39 = vpop.f32.mrb[8].mxu0  ;;  %v508_v48 = vpop.f32.mrb[8].mxu1 }
 0x1a5   : > { %v1213_v37 = vpop.eup %1212  ;;  %1224 = vrcp.f32 %v679_v36  ;;  %v1025_v34 = vmul.f32 -1.442695, %v428_v39  ;;  %v430_v32 = vpop.f32.mrb[9].mxu0  ;;  %v1041_v33 = vmul.f32 -1.442695, %v508_v48  ;;  %v759_v39 = vsub.f32 %v1781_v51, %v1747_v12 }
 0x1a6   : > { %v510_v35 = vpop.f32.mrb[9].mxu1  ;;  %v1215_v49 = vpop.eup %1214  ;;  %v664_v50 = vadd.f32 1.0, %v1213_v37  ;;  %1226 = vpow2.f32 %v1040_v38  ;;  %v775_v38 = vsub.f32 %v1784_v52, %v1750_v14  ;;  %v760_v51 = vsub.f32 %v1797_v55, %v1787_v53 }
 0x1a7   : > { %v680_v41 = vadd.f32 1.0, %v1215_v49  ;;  %1228 = vpow2.f32 %v1025_v34  ;;  %v776_v52 = vsub.f32 %v1800_v56, %v1790_v54  ;;  %v761_v56 = vsub.f32 %v1813_v59, %v1803_v57 }
 0x1a8   : > { %1230 = vrcp.f32 %v664_v50  ;;  %v433_v44 = vpop.f32.mrb[10].mxu0  ;;  %v513_v42 = vpop.f32.mrb[10].mxu1 }
 0x1a9   : > { %v1217_v43 = vpop.eup %1216  ;;  %1232 = vrcp.f32 %v680_v41  ;;  %v1026_v40 = vmul.f32 -1.442695, %v433_v44  ;;  %v435_v45 = vpop.f32.mrb[11].mxu0  ;;  %v1042_v36 = vmul.f32 -1.442695, %v513_v42 }
 0x1aa   : > { %v515_v46 = vpop.f32.mrb[11].mxu1  ;;  %v1219_v47 = vpop.eup %1218  ;;  %v665_v31 = vadd.f32 1.0, %v1217_v43  ;;  %1234 = vpow2.f32 %v1041_v33 }
 0x1ab   : > { %v681_v37 = vadd.f32 1.0, %v1219_v47  ;;  %1236 = vpow2.f32 %v1026_v40 }
 0x1ac   : > { %1238 = vrcp.f32 %v665_v31  ;;  %v438_v48 = vpop.f32.mrb[12].mxu0  ;;  %v518_v34 = vpop.f32.mrb[12].mxu1 }
 0x1ad   : > { %v1221_v32 = vpop.eup %1220  ;;  %1240 = vrcp.f32 %v681_v37  ;;  %v1027_v35 = vmul.f32 -1.442695, %v438_v48  ;;  %v1043_v49 = vmul.f32 -1.442695, %v518_v34  ;;  %v440_v50 = vpop.f32.mrb[13].mxu0 }
 0x1ae   : > { %v520_v41 = vpop.f32.mrb[13].mxu1  ;;  %v1223_v44 = vpop.eup %1222  ;;  %v666_v33 = vadd.f32 1.0, %v1221_v32  ;;  %1242 = vpow2.f32 %v1042_v36 }
 0x1af   : > { %v1225_v42 = vpop.eup %1224  ;;  %v791_v43 = vmul.f32 %v1223_v44, %v759_v39  ;;  %1244 = vpow2.f32 %v1027_v35 }
 0x1b0   : > { %v1227_v40 = vpop.eup %1226  ;;  %v807_v31 = vmul.f32 %v1225_v42, %v775_v38  ;;  %1246 = vrcp.f32 %v666_v33  ;;  %v443_v45 = vpop.f32.mrb[14].mxu0 }
 0x1b1   : > { %v523_v46 = vpop.f32.mrb[14].mxu1  ;;  %v1229_v47 = vpop.eup %1228  ;;  %v823_v37 = vadd.f32 %v791_v43, %v1747_v12  ;;  %v682_v48 = vadd.f32 1.0, %v1227_v40  ;;  %1248 = vpow2.f32 %v1043_v49  ;;  %v1028_v36 = vmul.f32 -1.442695, %v443_v45 }
 0x1b2   : > { %v445_v34 = vpop.f32.mrb[15].mxu0  ;;  %v525_v32 = vpop.f32.mrb[15].mxu1  ;;  %v839_v39 = vadd.f32 %v807_v31, %v1750_v14  ;;  %v667_v35 = vadd.f32 1.0, %v1229_v47  ;;  %v1044_v50 = vmul.f32 -1.442695, %v523_v46  ;;  %v777_v49 = vsub.f32 %v1816_v60, %v1806_v58 }
 0x1b3   : > { %v1231_v55 = vpop.eup %1230  ;;  %855 = vst [vmem:[%s2041_s18] sm:$0xff] %v823_v37  ;;  %1250 = vrcp.f32 %v682_v48  ;;  %v762_v37 = vsub.f32 %v1829_v63, %v1819_v61 }
 0x1b4   : > { %v1233_v41 = vpop.eup %1232  ;;  %v792_v12 = vmul.f32 %v1231_v55, %v760_v51  ;;  %871 = vst [vmem:[%s2041_s18 + $0x80] sm:$0xff] %v839_v39  ;;  %1252 = vrcp.f32 %v667_v35  ;;  %v448_v14 = vpop.f32.mrb[16].mxu0 }
 0x1b5   : > { %v1235_v38 = vpop.eup %1234  ;;  %v808_v44 = vmul.f32 %v1233_v41, %v776_v52  ;;  %v528_v33 = vpop.f32.mrb[16].mxu1  ;;  %1254 = vpow2.f32 %v1028_v36  ;;  %v1029_v40 = vmul.f32 -1.442695, %v448_v14 }
 0x1b6   : > { %v1237_v42 = vpop.eup %1236  ;;  %v824_v59 = vadd.f32 %v792_v12, %v1787_v53  ;;  %v683_v43 = vadd.f32 1.0, %v1235_v38  ;;  %v450_v31 = vpop.f32.mrb[17].mxu0  ;;  %1256 = vpow2.f32 %v1044_v50  ;;  %v1045_v60 = vmul.f32 -1.442695, %v528_v33 }
 0x1b7   : > { %v530_v51 = vpop.f32.mrb[17].mxu1  ;;  %v1239_v45 = vpop.eup %1238  ;;  %v840_v46 = vadd.f32 %v808_v44, %v1790_v54  ;;  %v668_v47 = vadd.f32 1.0, %v1237_v42  ;;  %v763_v44 = vsub.f32 %v1845_v3, %v1835_v1  ;;  %v779_v3 = vsub.f32 %v1848_v4, %v1838_v2 }
 0x1b8   : > { %v1241_v52 = vpop.eup %1240  ;;  %856 = vst [vmem:[%s2041_s18 + $0x8] sm:$0xff] %v824_v59  ;;  %v793_v48 = vmul.f32 %v1239_v45, %v761_v56  ;;  %1258 = vrcp.f32 %v683_v43  ;;  %v453_v36 = vpop.f32.mrb[18].mxu0  ;;  %v778_v56 = vsub.f32 %v1832_v0, %v1822_v62 }
 0x1b9   : > { %v1243_v53 = vpop.eup %1242  ;;  %872 = vst [vmem:[%s2041_s18 + $0x88] sm:$0xff] %v840_v46  ;;  %v809_v34 = vmul.f32 %v1241_v52, %v777_v49  ;;  %1260 = vrcp.f32 %v668_v47  ;;  %v533_v32 = vpop.f32.mrb[18].mxu1  ;;  %v1030_v35 = vmul.f32 -1.442695, %v453_v36 }
 0x1ba   : > { %v1245_v55 = vpop.eup %1244  ;;  %v825_v54 = vadd.f32 %v793_v48, %v1803_v57  ;;  %v684_v39 = vadd.f32 1.0, %v1243_v53  ;;  %1262 = vpow2.f32 %v1029_v40  ;;  %v455_v50 = vpop.f32.mrb[19].mxu0  ;;  %v1046_v14 = vmul.f32 -1.442695, %v533_v32 }
 0x1bb   : > { %v535_v41 = vpop.f32.mrb[19].mxu1  ;;  %v1247_v63 = vpop.eup %1246  ;;  %v841_v12 = vadd.f32 %v809_v34, %v1806_v58  ;;  %v669_v38 = vadd.f32 1.0, %v1245_v55  ;;  %1264 = vpow2.f32 %v1045_v60  ;;  %v764_v60 = vsub.f32 %v1861_v7, %v1851_v5 }
 0x1bc   : > { %v1249_v49 = vpop.eup %1248  ;;  %857 = vst [vmem:[%s2041_s18 + $0x10] sm:$0xff] %v825_v54  ;;  %v794_v57 = vmul.f32 %v1247_v63, %v762_v37  ;;  %1266 = vrcp.f32 %v684_v39  ;;  %v458_v42 = vpop.f32.mrb[20].mxu0  ;;  %v765_v63 = vsub.f32 %v1877_v11, %v1867_v9 }
 0x1bd   : > { %873 = vst [vmem:[%s2041_s18 + $0x90] sm:$0xff] %v841_v12  ;;  %1268 = vrcp.f32 %v669_v38  ;;  %v685_v33 = vadd.f32 1.0, %v1249_v49  ;;  %v538_v59 = vpop.f32.mrb[20].mxu1  ;;  %v1251_v43 = vpop.eup %1250  ;;  %v1031_v58 = vmul.f32 -1.442695, %v458_v42  ;;  %v781_v12 = vsub.f32 %v1880_v13, %v1870_v10 }
 0x1be   : > { %v826_v0 = vadd.f32 %v794_v57, %v1819_v61  ;;  %1270 = vpow2.f32 %v1030_v35  ;;  %v1047_v40 = vmul.f32 -1.442695, %v538_v59  ;;  %v460_v31 = vpop.f32.mrb[21].mxu0  ;;  %v540_v51 = vpop.f32.mrb[21].mxu1  ;;  %v810_v46 = vmul.f32 %v1251_v43, %v778_v56 }
 0x1bf   : > { %v1253_v45 = vpop.eup %1252  ;;  %1272 = vrcp.f32 %v685_v33  ;;  %v780_v35 = vsub.f32 %v1864_v8, %v1854_v6  ;;  %v766_v31 = vsub.f32 %v1893_v17, %v1883_v15 }
 0x1c0   : > { %v1255_v47 = vpop.eup %1254  ;;  %858 = vst [vmem:[%s2041_s18 + $0x18] sm:$0xff] %v826_v0  ;;  %v795_v52 = vmul.f32 %v1253_v45, %v763_v44  ;;  %1274 = vpow2.f32 %v1046_v14  ;;  %v842_v37 = vadd.f32 %v810_v46, %v1822_v62  ;;  %v463_v53 = vpop.f32.mrb[22].mxu0 }
 0x1c1   : > { %v1257_v61 = vpop.eup %1256  ;;  %v670_v48 = vadd.f32 1.0, %v1255_v47  ;;  %1276 = vpow2.f32 %v1031_v58  ;;  %v543_v34 = vpop.f32.mrb[22].mxu1  ;;  %v1032_v55 = vmul.f32 -1.442695, %v463_v53  ;;  %v782_v53 = vsub.f32 %v1896_v18, %v1886_v16 }
 0x1c2   : > { %v1259_v36 = vpop.eup %1258  ;;  %v827_v4 = vadd.f32 %v795_v52, %v1835_v1  ;;  %v686_v32 = vadd.f32 1.0, %v1257_v61  ;;  %1278 = vpow2.f32 %v1047_v40  ;;  %v465_v54 = vpop.f32.mrb[23].mxu0  ;;  %874 = vst [vmem:[%s2041_s18 + $0x98] sm:$0xff] %v842_v37  ;;  %v1048_v62 = vmul.f32 -1.442695, %v543_v34 }
 0x1c3   : > { %v545_v7 = vpop.f32.mrb[23].mxu1  ;;  %v1261_v39 = vpop.eup %1260  ;;  %v811_v50 = vmul.f32 %v1259_v36, %v779_v3  ;;  %1280 = vrcp.f32 %v670_v48  ;;  %v767_v18 = vsub.f32 %v1909_v21, %v1899_v19 }
 0x1c4   : > { %v1263_v41 = vpop.eup %1262  ;;  %859 = vst [vmem:[%s2041_s18 + $0x20] sm:$0xff] %v827_v4  ;;  %v796_v56 = vmul.f32 %v1261_v39, %v764_v60  ;;  %1282 = vrcp.f32 %v686_v32  ;;  %v468_v8 = vpop.f32.mrb[24].mxu0 }
 0x1c5   : > { %v1265_v1 = vpop.eup %1264  ;;  %v843_v38 = vadd.f32 %v811_v50, %v1838_v2  ;;  %v671_v49 = vadd.f32 1.0, %v1263_v41  ;;  %1284 = vpow2.f32 %v1032_v55  ;;  %v548_v44 = vpop.f32.mrb[24].mxu1  ;;  %v1033_v11 = vmul.f32 -1.442695, %v468_v8 }
 0x1c6   : > { %v1267_v57 = vpop.eup %1266  ;;  %v828_v14 = vadd.f32 %v796_v56, %v1851_v5  ;;  %v687_v33 = vadd.f32 1.0, %v1265_v1  ;;  %1286 = vpow2.f32 %v1048_v62  ;;  %v470_v42 = vpop.f32.mrb[25].mxu0  ;;  %v1049_v13 = vmul.f32 -1.442695, %v548_v44 }
 0x1c7   : > { %v550_v59 = vpop.f32.mrb[25].mxu1  ;;  %v1269_v43 = vpop.eup %1268  ;;  %875 = vst [vmem:[%s2041_s18 + $0xa0] sm:$0xff] %v843_v38  ;;  %v812_v0 = vmul.f32 %v1267_v57, %v780_v35  ;;  %1288 = vrcp.f32 %v671_v49 }
 0x1c8   : > { %v1271_v58 = vpop.eup %1270  ;;  %860 = vst [vmem:[%s2041_s18 + $0x28] sm:$0xff] %v828_v14  ;;  %v797_v2 = vmul.f32 %v1269_v43, %v765_v63  ;;  %1290 = vrcp.f32 %v687_v33  ;;  %v473_v45 = vpop.f32.mrb[26].mxu0  ;;  %v784_v43 = vsub.f32 %v1928_v26, %v1918_v24 }
 0x1c9   : > { %v1273_v40 = vpop.eup %1272  ;;  %v844_v5 = vadd.f32 %v812_v0, %v1854_v6  ;;  %v672_v51 = vadd.f32 1.0, %v1271_v58  ;;  %1292 = vpow2.f32 %v1033_v11  ;;  %v553_v3 = vpop.f32.mrb[26].mxu1  ;;  %v1034_v52 = vmul.f32 -1.442695, %v473_v45 }
 0x1ca   : > { %v1275_v46 = vpop.eup %1274  ;;  %v829_v47 = vadd.f32 %v797_v2, %v1867_v9  ;;  %v813_v60 = vmul.f32 %v1273_v40, %v781_v12  ;;  %1294 = vpow2.f32 %v1049_v13  ;;  %v475_v61 = vpop.f32.mrb[27].mxu0  ;;  %v1050_v9 = vmul.f32 -1.442695, %v553_v3 }
 0x1cb   : > { %v555_v37 = vpop.f32.mrb[27].mxu1  ;;  %v1277_v48 = vpop.eup %1276  ;;  %876 = vst [vmem:[%s2041_s18 + $0xa8] sm:$0xff] %v844_v5  ;;  %1296 = vrcp.f32 %v672_v51  ;;  %v688_v6 = vadd.f32 1.0, %v1275_v46  ;;  %v769_v40 = vsub.f32 %v1941_v29, %v1931_v27  ;;  %v785_v51 = vsub.f32 %v1944_v30, %v1934_v28 }
 0x1cc   : > { %v1279_v17 = vpop.eup %1278  ;;  %861 = vst [vmem:[%s2041_s18 + $0x30] sm:$0xff] %v829_v47  ;;  %v845_v34 = vadd.f32 %v813_v60, %v1870_v10  ;;  %v673_v36 = vadd.f32 1.0, %v1277_v48  ;;  %1298 = vpow2.f32 %v1034_v52  ;;  %v478_v55 = vpop.f32.mrb[28].mxu0  ;;  %v783_v10 = vsub.f32 %v1912_v22, %v1902_v20  ;;  %v2288_v60 = vld [vmem:[#allocation13_spill] sm:$0xff]  ;;  %v2289_v52 = vld [vmem:[#allocation15_spill] sm:$0xff]  ;;  %v2290_v48 = vld [vmem:[#allocation14_spill] sm:$0xff] }
 0x1cd   : > { %v1281_v4 = vpop.eup %1280  ;;  %1300 = vrcp.f32 %v688_v6  ;;  %v689_v32 = vadd.f32 1.0, %v1279_v17  ;;  %v558_v54 = vpop.f32.mrb[28].mxu1  ;;  %v1035_v35 = vmul.f32 -1.442695, %v478_v55  ;;  %v768_v22 = vsub.f32 %v1925_v25, %v1915_v23 }
 0x1ce   : > { %v1283_v7 = vpop.eup %1282  ;;  %877 = vst [vmem:[%s2041_s18 + $0xb0] sm:$0xff] %v845_v34  ;;  %v798_v39 = vmul.f32 %v1281_v4, %v766_v31  ;;  %1302 = vrcp.f32 %v673_v36  ;;  %v480_v50 = vpop.f32.mrb[29].mxu0  ;;  %v1051_v38 = vmul.f32 -1.442695, %v558_v54  ;;  %v770_v61 = vsub.f32 %v2289_v52, %v2288_v60  ;;  %v2306_v52 = vld [vmem:[#allocation30_spill] sm:$0xff] }
 0x1cf   : > { %v560_v62 = vpop.f32.mrb[29].mxu1  ;;  %v1285_v41 = vpop.eup %1284  ;;  %v814_v63 = vmul.f32 %v1283_v7, %v782_v53  ;;  %1304 = vrcp.f32 %v689_v32  ;;  %v2291_v53 = vld [vmem:[#allocation16_spill] sm:$0xff]  ;;  %v2292_v7 = vld [vmem:[#allocation17_spill] sm:$0xff]  ;;  %v2294_v50 = vld [vmem:[#allocation18_spill] sm:$0xff] }
 0x1d0   : > { %v1287_v56 = vpop.eup %1286  ;;  %v830_v1 = vadd.f32 %v798_v39, %v1883_v15  ;;  %v674_v12 = vadd.f32 1.0, %v1285_v41  ;;  %1306 = vpow2.f32 %v1050_v9  ;;  %v483_v44 = vpop.f32.mrb[30].mxu0  ;;  %v786_v6 = vsub.f32 %v2291_v53, %v2290_v48  ;;  %v2295_v62 = vld [vmem:[#allocation20_spill] sm:$0xff] }
 0x1d1   : > { %v1289_v21 = vpop.eup %1288  ;;  %v846_v49 = vadd.f32 %v814_v63, %v1886_v16  ;;  %v690_v8 = vadd.f32 1.0, %v1287_v56  ;;  %1308 = vpow2.f32 %v1035_v35  ;;  %v563_v57 = vpop.f32.mrb[30].mxu1  ;;  %v1036_v11 = vmul.f32 -1.442695, %v483_v44 }
 0x1d2   : > { %v1291_v14 = vpop.eup %1290  ;;  %862 = vst [vmem:[%s2041_s18 + $0x38] sm:$0xff] %v830_v1  ;;  %v799_v33 = vmul.f32 %v1289_v21, %v767_v18  ;;  %1310 = vrcp.f32 %v674_v12  ;;  %v485_v15 = vpop.f32.mrb[31].mxu0  ;;  %v1052_v25 = vmul.f32 -1.442695, %v563_v57  ;;  %v2293_v18 = vld [vmem:[#allocation19_spill] sm:$0xff]  ;;  %v787_v41 = vsub.f32 %v2295_v62, %v2294_v50  ;;  %v2296_v1 = vld [vmem:[#allocation21_spill] sm:$0xff] }
 0x1d3   : > { %v565_v42 = vpop.f32.mrb[31].mxu1  ;;  %v1293_v59 = vpop.eup %1292  ;;  %878 = vst [vmem:[%s2041_s18 + $0xb8] sm:$0xff] %v846_v49  ;;  %v815_v16 = vmul.f32 %v1291_v14, %v783_v10  ;;  %1312 = vrcp.f32 %v690_v8  ;;  %v771_v39 = vsub.f32 %v2293_v18, %v2292_v7  ;;  %v2297_v12 = vld [vmem:[#allocation23_spill] sm:$0xff]  ;;  %v2298_v15 = vld [vmem:[#allocation22_spill] sm:$0xff] }
 0x1d4   : > { %v1295_v0 = vpop.eup %1294  ;;  %v831_v13 = vadd.f32 %v799_v33, %v1899_v19  ;;  %v675_v58 = vadd.f32 1.0, %v1293_v59  ;;  %1314 = vpow2.f32 %v1051_v38  ;;  %v772_v38 = vsub.f32 %v2297_v12, %v2296_v1  ;;  %v2299_v42 = vld [vmem:[#allocation24_spill] sm:$0xff] }
 0x1d5   : > { %v1297_v2 = vpop.eup %1296  ;;  %v847_v31 = vadd.f32 %v815_v16, %v1902_v20  ;;  %v691_v5 = vadd.f32 1.0, %v1295_v0  ;;  %1316 = vpow2.f32 %v1036_v11  ;;  %v788_v59 = vsub.f32 %v2299_v42, %v2298_v15  ;;  %v2300_v0 = vld [vmem:[#allocation25_spill] sm:$0xff] }
 0x1d6   : > { %v1299_v26 = vpop.eup %1298  ;;  %863 = vst [vmem:[%s2041_s18 + $0x40] sm:$0xff] %v831_v13  ;;  %v800_v45 = vmul.f32 %v1297_v2, %v768_v22  ;;  %1318 = vrcp.f32 %v675_v58  ;;  %v2301_v13 = vld [vmem:[#allocation27_spill] sm:$0xff] }
 0x1d7   : > { %v1301_v19 = vpop.eup %1300  ;;  %879 = vst [vmem:[%s2041_s18 + $0xc0] sm:$0xff] %v847_v31  ;;  %1320 = vrcp.f32 %v691_v5  ;;  %v676_v3 = vadd.f32 1.0, %v1299_v26  ;;  %v773_v58 = vsub.f32 %v2301_v13, %v2300_v0  ;;  %v2302_v31 = vld [vmem:[#allocation26_spill] sm:$0xff]  ;;  %v2303_v5 = vld [vmem:[#allocation28_spill] sm:$0xff] }
 0x1d8   : > { %v1303_v46 = vpop.eup %1302  ;;  %v832_v47 = vadd.f32 %v800_v45, %v1915_v23  ;;  %v816_v29 = vmul.f32 %v1301_v19, %v784_v43  ;;  %1322 = vpow2.f32 %v1052_v25  ;;  %v789_v26 = vsub.f32 %v2303_v5, %v2302_v31  ;;  %v2304_v45 = vld [vmem:[#allocation29_spill] sm:$0xff]  ;;  %v2305_v19 = vld [vmem:[#allocation31_spill] sm:$0xff] }
 0x1d9   : > { %v1305_v20 = vpop.eup %1304  ;;  %v801_v37 = vmul.f32 %v1303_v46, %v769_v40  ;;  %1324 = vrcp.f32 %v676_v3  ;;  %v774_v3 = vsub.f32 %v2305_v19, %v2304_v45 }
 0x1da   : > { %v1307_v30 = vpop.eup %1306  ;;  %864 = vst [vmem:[%s2041_s18 + $0x48] sm:$0xff] %v832_v47  ;;  %v848_v17 = vadd.f32 %v816_v29, %v1918_v24  ;;  %v817_v34 = vmul.f32 %v1305_v20, %v785_v51 }
 0x1db   : > { %v1309_v23 = vpop.eup %1308  ;;  %v833_v36 = vadd.f32 %v801_v37, %v1931_v27  ;;  %v692_v9 = vadd.f32 1.0, %v1307_v30 }
 0x1dc   : > { %v1311_v4 = vpop.eup %1310  ;;  %880 = vst [vmem:[%s2041_s18 + $0xc8] sm:$0xff] %v848_v17  ;;  %v849_v32 = vadd.f32 %v817_v34, %v1934_v28  ;;  %v677_v55 = vadd.f32 1.0, %v1309_v23 }
 0x1dd   : > { %v1313_v54 = vpop.eup %1312  ;;  %865 = vst [vmem:[%s2041_s18 + $0x50] sm:$0xff] %v833_v36  ;;  %v802_v35 = vmul.f32 %v1311_v4, %v770_v61  ;;  %1326 = vrcp.f32 %v692_v9  ;;  %v2307_v61 = vld [vmem:[#allocation32_spill] sm:$0xff] }
 0x1de   : > { %v1315_v24 = vpop.eup %1314  ;;  %881 = vst [vmem:[%s2041_s18 + $0xd0] sm:$0xff] %v849_v32  ;;  %v818_v27 = vmul.f32 %v1313_v54, %v786_v6  ;;  %1328 = vrcp.f32 %v677_v55  ;;  %v790_v37 = vsub.f32 %v2307_v61, %v2306_v52 }
 0x1df   : > { %v1317_v10 = vpop.eup %1316  ;;  %v834_v28 = vadd.f32 %v802_v35, %v2288_v60  ;;  %v693_v63 = vadd.f32 1.0, %v1315_v24 }
 0x1e0   : > { %v1319_v56 = vpop.eup %1318  ;;  %v850_v21 = vadd.f32 %v818_v27, %v2290_v48  ;;  %v678_v49 = vadd.f32 1.0, %v1317_v10 }
 0x1e1   : > { %v1321_v8 = vpop.eup %1320  ;;  %866 = vst [vmem:[%s2041_s18 + $0x58] sm:$0xff] %v834_v28  ;;  %v803_v44 = vmul.f32 %v1319_v56, %v771_v39  ;;  %1330 = vrcp.f32 %v693_v63 }
 0x1e2   : > { %v1323_v57 = vpop.eup %1322  ;;  %882 = vst [vmem:[%s2041_s18 + $0xd8] sm:$0xff] %v850_v21  ;;  %v819_v14 = vmul.f32 %v1321_v8, %v787_v41  ;;  %1332 = vrcp.f32 %v678_v49 }
 0x1e3   : > { %v1325_v22 = vpop.eup %1324  ;;  %v835_v33 = vadd.f32 %v803_v44, %v2292_v7  ;;  %v694_v11 = vadd.f32 1.0, %v1323_v57 }
 0x1e4   : > { %v851_v43 = vadd.f32 %v819_v14, %v2294_v50  ;;  %v804_v16 = vmul.f32 %v1325_v22, %v772_v38 }
 0x1e5   : > { %867 = vst [vmem:[%s2041_s18 + $0x60] sm:$0xff] %v835_v33  ;;  %1334 = vrcp.f32 %v694_v11 }
 0x1e6   : > { %883 = vst [vmem:[%s2041_s18 + $0xe0] sm:$0xff] %v851_v43  ;;  %v836_v25 = vadd.f32 %v804_v16, %v2296_v1 }
 0x1e7   : > { %v1327_v2 = vpop.eup %1326 }
 0x1e8   : > { %v1329_v40 = vpop.eup %1328  ;;  %868 = vst [vmem:[%s2041_s18 + $0x68] sm:$0xff] %v836_v25  ;;  %v820_v51 = vmul.f32 %v1327_v2, %v788_v59 }
 0x1e9   : > { %v805_v46 = vmul.f32 %v1329_v40, %v773_v58 }
 0x1ea   : > { %v852_v47 = vadd.f32 %v820_v51, %v2298_v15 }
 0x1eb   : > { %v1331_v29 = vpop.eup %1330  ;;  %v837_v20 = vadd.f32 %v805_v46, %v2300_v0 }
 0x1ec   : > { %v1333_v60 = vpop.eup %1332  ;;  %884 = vst [vmem:[%s2041_s18 + $0xe8] sm:$0xff] %v852_v47  ;;  %v821_v30 = vmul.f32 %v1331_v29, %v789_v26 }
 0x1ed   : > { %869 = vst [vmem:[%s2041_s18 + $0x70] sm:$0xff] %v837_v20  ;;  %v806_v48 = vmul.f32 %v1333_v60, %v774_v3 }
 0x1ee   : > { %v853_v53 = vadd.f32 %v821_v30, %v2302_v31 }
 0x1ef   : > { %v1335_v6 = vpop.eup %1334  ;;  %v838_v17 = vadd.f32 %v806_v48, %v2304_v45 }
 0x1f0   : > { %885 = vst [vmem:[%s2041_s18 + $0xf0] sm:$0xff] %v853_v53  ;;  %v822_v34 = vmul.f32 %v1335_v6, %v790_v37 }
 0x1f1   : > { %870 = vst [vmem:[%s2041_s18 + $0x78] sm:$0xff] %v838_v17 }
 0x1f2   : > { %v854_v23 = vadd.f32 %v822_v34, %v2306_v52 }
 0x1f4   : > { %886 = vst [vmem:[%s2041_s18 + $0xf8] sm:$0xff] %v854_v23 }
 0x1f5   : > { %1437 = shalt.err (!%p1434_p6)
}
 0x1f6   : > { %s1438_s22 = scalar_lea.hbm %s2162_s23, 4096  ;;  %s1442_s10 = scalar_lea.hbm %s2213_s3, 8192 }
 0x1f7   : > { %p1439_p8 = scmp.ne.s32.totalorder %s2162_s23, %s1438_s22  ;;  %p1443_p4 = scmp.lt.u32.totalorder %s2162_s23, %s2213_s3 }
 0x1f8   : > { %p1444_p11 = scmp.lt.u32.totalorder %s1442_s10, %s1438_s22  ;;  %p1446_p3 = scmp.lt.u32.totalorder %s1438_s22, %s2162_s23 }
 0x1f9   : > { %p1440_p10 = pnand %p1439_p8, %p1623_p12 }
 0x1fa   : > { %p1445_p13 = por %p1444_p11, %p1443_p4 }
 0x1fb   : > { %p1441_p0 = pneg %p1440_p10 }
 0x1fc   : > { %p1447_p7 = por %p1446_p3, %p1445_p13 }
 0x1fe   : > { %p1448_p9 = pnand %p1447_p7, %p1441_p0 }
 0x200   : > { %1451 = shalt.err (!%p1448_p9)
}
 0x201   : > { %s1507_s20 = smov 128   ;;  %s1508_s7 = smov 8  }
 0x202   : > { %1149 = dma.vmem_to_hbm [thread:$0]  (%p1623_p12), %s2164_s29, 4096, %s2162_s23, %s888_s16, %s1507_s20, %s1507_s20, %s1508_s7  }
 0x203 PF: > { %s916_s9 = sand.u32 1, %s1486_s12   ;;  %p2308_p1 = scmp.ne.s32.totalorder %s2254_s19, 0 }
 0x204   : > { %p2309_p5 = scmp.ge.s32.totalorder %s1498_s15, 2  ;;  %s917_s18 = scalar_lea.sflag [#allocation4], %s916_s9 }
 0x206   : > { %p1163_p2 = pnand %p2309_p5, %p2308_p1 }
 0x208   : > { %1481 = dma.done.wait (!%p1163_p2), %s917_s18, 4096  }
 0x209   : > { %1483 = vsyncadd (!%p1163_p2), %s917_s18, 4294963200  ;;  %p19_p6 = scmp.ge.s32.totalorder %s1585_s24, 4   ;;  %s2310_s12 = smov %s1490_s13 }
 0x20a   : > { %s2311_s13 = smov %s1494_s14  ;;  %s2312_s14 = smov %s1619_s17 }
 0x20b   : > { %s2313_s15 = smov %s1585_s24  ;;  %21 = sbr.rel (!%p19_p6) target bundleno = 10 (0xa), region = 94 }
 0x212   :  { %922 = vsyncpa [#allocation3], 1 }
 0x213   :  { %924 = vsyncpa [#allocation3 + $0x1], 1 }
 0x214   :  { %925 = vsyncpa [#allocation6], 1 }
 0x215   :  { %927 = vsyncpa [#allocation6 + $0x1], 1 }
 0x216   :  { %928 = vsyncpa [#allocation4], 1 }
 0x217   :  { %930 = vsyncpa [#allocation4 + $0x1], 1 }

</bundles_post_ra>
